<compile_context>
chip_gen: v6e
topology: v6e:2x2x1
jax: 0.10.0
libtpu: 0.0.40
codegen_flags: <defaults>
</compile_context>

<pallas_src>
import jax
import jax.numpy as jnp
from jax.experimental import pallas as pl
from jax.experimental.pallas import tpu as pltpu

ROW_ALIGN = 16  # sublane-friendly for bf16-packed tiles


def _cdiv(a, b):
    return (a + b - 1) // b


def _round_up(x, m):
    return _cdiv(x, m) * m


def _choose_tiles(M, *, max_tile_m=2048, min_rows_for_split=1024):
    """cdiv-based tiling: minimal row padding, >=2 tiles at large M (v7x 2xTC)."""
    m_rows = _round_up(max(M, 1), ROW_ALIGN)
    num_tiles = _cdiv(m_rows, max_tile_m)
    if num_tiles == 1 and m_rows >= min_rows_for_split:
        num_tiles = 2
    tile_m = _round_up(_cdiv(m_rows, num_tiles), ROW_ALIGN)
    m_pad = tile_m * num_tiles
    return tile_m, m_pad, num_tiles


# ----------------------------------------------------------------------------
# Fused Pallas kernel:  o = relu(x @ W_a + b_a) @ w2 + b2
#   x, W_a, w2 are bf16 MXU operands; accumulation and biases are f32.
# ----------------------------------------------------------------------------
def _fused_clip_projector_kernel(x_ref, wa_ref, ba_ref, w2_ref, b2_ref, o_ref):
    h = jnp.dot(x_ref[...], wa_ref[...], preferred_element_type=jnp.float32)
    h = jnp.maximum(h + ba_ref[...], 0.0)
    out = jnp.dot(h.astype(jnp.bfloat16), w2_ref[...],
                  preferred_element_type=jnp.float32)
    o_ref[...] = (out + b2_ref[...]).astype(o_ref.dtype)


def fused_clip_projector(patches_bf16, wa, ba, w2, b2, *, max_tile_m=2048):
    """patches_bf16: [M, K] bf16 (no lane padding). Returns [M_pad, P] f32.

    Padded rows (M_pad > M) still pick up the biases / relu -- harmless only
    because the caller crops out[:M]; never accumulate into the padded slab.
    """
    M, K = patches_bf16.shape
    D = wa.shape[1]
    P = w2.shape[1]

    tile_m, m_pad, num_tiles = _choose_tiles(M, max_tile_m=max_tile_m)
    if m_pad != M:
        patches_bf16 = jnp.pad(patches_bf16, ((0, m_pad - M), (0, 0)))

    # real (unpadded, post-fold) work for the scheduler
    flops = 2 * M * (K * D + D * P)
    bytes_accessed = (M * K * 2                 # x in (bf16)
                      + (K * D + D * P) * 2     # weights (bf16)
                      + (D + P) * 4             # biases (f32)
                      + M * P * 4)              # out (f32)

    return pl.pallas_call(
        _fused_clip_projector_kernel,
        out_shape=jax.ShapeDtypeStruct((m_pad, P), jnp.float32),
        grid_spec=pltpu.PrefetchScalarGridSpec(
            num_scalar_prefetch=0,
            grid=(num_tiles,),
            in_specs=[
                pl.BlockSpec((tile_m, K), lambda i: (i, 0)),  # x tile  [tile_m, 48]
                pl.BlockSpec((K, D), lambda i: (0, 0)),       # W_a     [48, 32]
                pl.BlockSpec((1, D), lambda i: (0, 0)),       # b_a     [1, 32]
                pl.BlockSpec((D, P), lambda i: (0, 0)),       # w2      [32, 16]
                pl.BlockSpec((1, P), lambda i: (0, 0)),       # b2      [1, 16]
            ],
            out_specs=pl.BlockSpec((tile_m, P), lambda i: (i, 0)),
        ),
        compiler_params=pltpu.CompilerParams(
            dimension_semantics=("parallel",)),
        cost_estimate=pl.CostEstimate(
            flops=flops, transcendentals=0, bytes_accessed=bytes_accessed),
    )(patches_bf16, wa, ba, w2, b2)


# ----------------------------------------------------------------------------
# ClipProjector forward
# ----------------------------------------------------------------------------
class ClipProjectorPallas:
    def __init__(self, key, feature_dim=32, projection_dim=16,
                 patch_size=4, in_chans=3):
        self.feature_dim = feature_dim
        self.projection_dim = projection_dim
        self.patch_size = patch_size
        self.in_chans = in_chans
        patch_dim = in_chans * patch_size * patch_size

        k = jax.random.split(key, 5)
        s = lambda fan_in: 1.0 / jnp.sqrt(fan_in)
        # frozen "CLIP" patch embedding (stand-in for CLIPVisionModel)
        self.w_patch = jax.random.normal(k[0], (patch_dim, feature_dim),
                                         jnp.float32) * s(patch_dim)
        self.b_patch = jnp.zeros((feature_dim,), jnp.float32)
        # trainable projection head: Linear(D,D) -> ReLU -> Linear(D,P)
        self.w1 = jax.random.normal(k[1], (feature_dim, feature_dim),
                                    jnp.float32) * s(feature_dim)
        self.b1 = jax.random.normal(k[2], (feature_dim,), jnp.float32) * s(feature_dim)
        self.w2 = jax.random.normal(k[3], (feature_dim, projection_dim),
                                    jnp.float32) * s(feature_dim)
        self.b2 = jax.random.normal(k[4], (projection_dim,), jnp.float32) * s(feature_dim)

        # --- fold the frozen patch embedding into the first projection layer ---
        #   relu((x @ w_patch + b_patch) @ w1 + b1) == relu(x @ W_a + b_a)
        w_a = self.w_patch @ self.w1                    # [patch_dim, D]
        b_a = self.b_patch @ self.w1 + self.b1          # [D]

        # --- bf16 MXU operand copies (cast once; f32 accumulation in-kernel) ---
        self.wa_bf16 = w_a.astype(jnp.bfloat16)
        self.ba_f32 = b_a.reshape(1, -1)
        self.w2_bf16 = self.w2.astype(jnp.bfloat16)
        self.b2_f32 = self.b2.reshape(1, -1)

    def __call__(self, images):
        """images: [B, 3, H, W] (NCHW, like the PyTorch module).

        Returns:
            projected_features: [B, num_tokens, projection_dim] float32
            mask:               [B, num_tokens] bool, all False (attend to all)
        """
        B, C, H, W = images.shape
        p = self.patch_size
        gh, gw = H // p, W // p
        T = gh * gw

        # --- glue: NCHW -> patch tokens [B*T, C*p*p] (kept in XLA, no padding) ---
        x = images.reshape(B, C, gh, p, gw, p)
        x = jnp.transpose(x, (0, 2, 4, 1, 3, 5))           # [B, gh, gw, C, p, p]
        patches = x.reshape(B * T, C * p * p).astype(jnp.bfloat16)

        # --- single fused Pallas kernel: (folded embed+Linear) -> ReLU -> Linear ---
        out = fused_clip_projector(patches, self.wa_bf16, self.ba_f32,
                                   self.w2_bf16, self.b2_f32)

        projected_features = out[:B * T, :].reshape(B, T, self.projection_dim)
        mask = jnp.zeros((B, T), dtype=jnp.bool_)
        return projected_features, mask


# ----------------------------------------------------------------------------
if __name__ == "__main__":
    key = jax.random.PRNGKey(0)
    k_param, k_img = jax.random.split(key)

    model = ClipProjectorPallas(k_param, feature_dim=32, projection_dim=16,
                                patch_size=4, in_chans=3)

    # small image consistent with the module's [B, 3, H, W] input
    images = jax.random.normal(k_img, (2, 3, 16, 16), jnp.float32)

    feats, mask = model(images)
    jax.block_until_ready(feats)
    jax.block_until_ready(mask)

    assert feats.shape == (2, 16, 16), feats.shape          # [B, num_tokens, proj_dim]
    assert mask.shape == (2, 16) and mask.dtype == jnp.bool_
    assert not bool(mask.any())

    # plain-JAX f32 reference of the whole (unfolded) forward;
    # tolerance loosened for bf16 MXU operands (f32 accumulation).
    B, T, D, p = 2, 16, 32, 4
    patches = jnp.transpose(images.reshape(2, 3, 4, p, 4, p),
                            (0, 2, 4, 1, 3, 5)).reshape(B * T, 48)
    tok = patches @ model.w_patch + model.b_patch
    ref = (jnp.maximum(tok @ model.w1 + model.b1, 0.0) @ model.w2 + model.b2)
    ref = ref.reshape(B, T, 16)
    max_err = float(jnp.max(jnp.abs(feats - ref)))
    assert jnp.allclose(feats, ref, atol=3e-2, rtol=3e-2), max_err

    print("KERNEL_OK")
</pallas_src>

<mosaic_0001>
module attributes {stable_mosaic.version = 11 : i64} {
  func.func @_fused_clip_projector_kernel(%arg0: i32, %arg1: memref<32x48xbf16, #tpu.memory_space<vmem>>, %arg2: memref<48x32xbf16, #tpu.memory_space<vmem>>, %arg3: memref<1x32xf32, #tpu.memory_space<vmem>>, %arg4: memref<32x16xbf16, #tpu.memory_space<vmem>>, %arg5: memref<1x16xf32, #tpu.memory_space<vmem>>, %arg6: memref<32x16xf32, #tpu.memory_space<vmem>>) attributes {dimension_semantics = [#tpu.dimension_semantics<parallel>], iteration_bounds = array<i64: 1>, scalar_prefetch = 0 : i64, scratch_operands = 0 : i64, tpu.core_type = #tpu.core_type<tc>, window_params = [{transform_indices = @transform_0, window_bounds = array<i64: 32, 48>}, {pipeline_mode = #tpu.pipeline_mode<synchronous>, transform_indices = @transform_1, window_bounds = array<i64: 48, 32>}, {pipeline_mode = #tpu.pipeline_mode<synchronous>, transform_indices = @transform_2, window_bounds = array<i64: 1, 32>}, {pipeline_mode = #tpu.pipeline_mode<synchronous>, transform_indices = @transform_3, window_bounds = array<i64: 32, 16>}, {pipeline_mode = #tpu.pipeline_mode<synchronous>, transform_indices = @transform_4, window_bounds = array<i64: 1, 16>}, {transform_indices = @transform_5, window_bounds = array<i64: 32, 16>}]} {
    %c0 = arith.constant 0 : index
    %c0_0 = arith.constant 0 : index
    %0 = vector.load %arg1[%c0, %c0_0] : memref<32x48xbf16, #tpu.memory_space<vmem>>, vector<32x48xbf16>
    %c0_1 = arith.constant 0 : index
    %c0_2 = arith.constant 0 : index
    %1 = vector.load %arg2[%c0_1, %c0_2] : memref<48x32xbf16, #tpu.memory_space<vmem>>, vector<48x32xbf16>
    %cst = arith.constant dense<0.000000e+00> : vector<32x32xf32>
    %2 = tpu.matmul %0, %1, %cst {dimension_numbers = #tpu.dot_dimension_numbers<[1], [0], [0], [1], [0, 0, 1, 1], [], []>} : vector<32x48xbf16>, vector<48x32xbf16>, vector<32x32xf32> -> vector<32x32xf32>
    %c0_3 = arith.constant 0 : index
    %c0_4 = arith.constant 0 : index
    %3 = vector.load %arg3[%c0_3, %c0_4] : memref<1x32xf32, #tpu.memory_space<vmem>>, vector<1x32xf32>
    %4 = vector.broadcast %3 : vector<1x32xf32> to vector<32x32xf32>
    %5 = arith.addf %2, %4 : vector<32x32xf32>
    %cst_5 = arith.constant 0.000000e+00 : f32
    %6 = vector.broadcast %cst_5 : f32 to vector<32x32xf32>
    %7 = arith.maximumf %5, %6 : vector<32x32xf32>
    %8 = arith.truncf %7 : vector<32x32xf32> to vector<32x32xbf16>
    %c0_6 = arith.constant 0 : index
    %c0_7 = arith.constant 0 : index
    %9 = vector.load %arg4[%c0_6, %c0_7] : memref<32x16xbf16, #tpu.memory_space<vmem>>, vector<32x16xbf16>
    %cst_8 = arith.constant dense<0.000000e+00> : vector<32x16xf32>
    %10 = tpu.matmul %8, %9, %cst_8 {dimension_numbers = #tpu.dot_dimension_numbers<[1], [0], [0], [1], [0, 0, 1, 1], [], []>} : vector<32x32xbf16>, vector<32x16xbf16>, vector<32x16xf32> -> vector<32x16xf32>
    %c0_9 = arith.constant 0 : index
    %c0_10 = arith.constant 0 : index
    %11 = vector.load %arg5[%c0_9, %c0_10] : memref<1x16xf32, #tpu.memory_space<vmem>>, vector<1x16xf32>
    %12 = vector.broadcast %11 : vector<1x16xf32> to vector<32x16xf32>
    %13 = arith.addf %10, %12 : vector<32x16xf32>
    %c0_11 = arith.constant 0 : index
    %c0_12 = arith.constant 0 : index
    %14 = vector.load %arg6[%c0_11, %c0_12] : memref<32x16xf32, #tpu.memory_space<vmem>>, vector<32x16xf32>
    tpu.vector_store %arg6[%c0_11, %c0_12], %13 {strides = array<i32>} : memref<32x16xf32, #tpu.memory_space<vmem>>, vector<32x16xf32>,
    return
  }
  func.func @transform_0(%arg0: i32) -> (i32, i32) {
    %c0_i32 = arith.constant 0 : i32
    %c0_i32_0 = arith.constant 0 : i32
    return %arg0, %c0_i32 : i32, i32
  }
  func.func @transform_1(%arg0: i32) -> (i32, i32) {
    %c0_i32 = arith.constant 0 : i32
    %c0_i32_0 = arith.constant 0 : i32
    %c0_i32_1 = arith.constant 0 : i32
    return %c0_i32, %c0_i32_0 : i32, i32
  }
  func.func @transform_2(%arg0: i32) -> (i32, i32) {
    %c0_i32 = arith.constant 0 : i32
    %c0_i32_0 = arith.constant 0 : i32
    %c0_i32_1 = arith.constant 0 : i32
    return %c0_i32, %c0_i32_0 : i32, i32
  }
  func.func @transform_3(%arg0: i32) -> (i32, i32) {
    %c0_i32 = arith.constant 0 : i32
    %c0_i32_0 = arith.constant 0 : i32
    %c0_i32_1 = arith.constant 0 : i32
    return %c0_i32, %c0_i32_0 : i32, i32
  }
  func.func @transform_4(%arg0: i32) -> (i32, i32) {
    %c0_i32 = arith.constant 0 : i32
    %c0_i32_0 = arith.constant 0 : i32
    %c0_i32_1 = arith.constant 0 : i32
    return %c0_i32, %c0_i32_0 : i32, i32
  }
  func.func @transform_5(%arg0: i32) -> (i32, i32) {
    %c0_i32 = arith.constant 0 : i32
    %c0_i32_0 = arith.constant 0 : i32
    return %arg0, %c0_i32 : i32, i32
  }
}

</mosaic_0001>

<bundles_post_ra>
// kernel: tpu_custom_call.1
= control target key start
LH: loop header
LB: loop body
LE: loop exit
PB: predicated region body
PF: predicated region fallthrough
CT: control target
= control target key end

     0   :  { %vm66_vm0 = vcmask 392192   ;;  %vm151_vm1 = vcmask 261120   ;;  %vm207_vm2 = vcmask 130048   ;;  %s332_s1 = inlined_call_operand.vmem [shape: bf16[48,32], index: 1, kind: input, shape index: {}]   ;;  %s333_s0 = inlined_call_operand.vmem [shape: bf16[32,48], index: 0, kind: input, shape index: {}]   ;;  %s334_s3 = inlined_call_operand.vmem [shape: bf16[32,16], index: 3, kind: input, shape index: {}]   ;;  %s335_s2 = inlined_call_operand.vmem [shape: f32[1,32], index: 2, kind: input, shape index: {}]   ;;  %s336_s4 = inlined_call_operand.vmem [shape: f32[1,16], index: 4, kind: input, shape index: {}]   ;;  %s337_s5 = inlined_call_operand.vmem [shape: f32[32,16], index: 5, kind: output, shape index: {}]  }
   0x1   :  { %v256_v0 = vld [vmem:[%s332_s1 + $0x10] sm:$0xff]   ;;  %v257_v1 = vld [vmem:[%s332_s1 + $0x8] sm:$0xff]   ;;  %v259_v2 = vld [vmem:[%s333_s0] sm:$0xff]  }
   0x2   :  { %238 = vmatprep.subr.bf16.mxu0 %v256_v0  ;;  %v258_v3 = vld [vmem:[%s332_s1] sm:$0xff]   ;;  %244 = vmatprep.mubr.msk.bf16.mxu0 %vm66_vm0, %v259_v2  ;;  %v260_v4 = vld [vmem:[%s333_s0 + $0x8] sm:$0xff]  }
   0x3   :  { %239 = vmatpush3.bf16.msra.mxu0 %v256_v0  ;;  %v261_v5 = vld [vmem:[%s334_s3 + $0x8] sm:$0xff]   ;;  %v262_v6 = vld [vmem:[%s334_s3] sm:$0xff]  }
   0x4   :  { %240 = vmatprep.subr.bf16.mxu0 %v257_v1  ;;  %248 = vmatprep.subr.bf16.mxu1 %v261_v5  ;;  %v216_v9 = vld [vmem:[%s335_s2] ss:$0 sm:$0xff] }
   0x5   :  { %249 = vmatpush3.bf16.msra.mxu1 %v261_v5  ;;  %v224_v22 = vld [vmem:[%s336_s4] ss:$0 sm:$0xff] }
   0x6   :  { %250 = vmatprep.subr.bf16.mxu1 %v262_v6 }
   0x7   :  { %241 = vmatpush3.bf16.msra.mxu0 %v257_v1 }
   0x8   :  { %242 = vmatprep.subr.bf16.mxu0 %v258_v3 }
   0x9   :  { %251 = vmatpush3.bf16.msra.mxu1 %v262_v6 }
   0xb   :  { %243 = vmatpush3.bf16.msra.mxu0 %v258_v3 }
   0xe   :  { %245 = vmatmul.mubr.msk.bf16.vlgmr.msra.gmra.mxu0 %vm66_vm0, %v260_v4 }
  0xce   :  { %v246_v7 = vpop.f32.mrf.mxu0 }
  0xcf   :  { %v116_v13 = vadd.f32 %v246_v7, %v216_v9 }
  0xd0   :  { %v107_v8 = vpop.f32.mrf.mxu0 }
  0xd1   :  { %v108_v11 = vadd.f32 %v216_v9, %v107_v8  ;;  %v124_v19 = vmax.f32 %v116_v13, 0.0 }
  0xd2   :  { %v247_v10 = vpop.f32.mrf.mxu0 }
  0xd3   :  { %v119_v12 = vadd.f32 %v247_v10, %v216_v9  ;;  %v122_v17 = vmax.f32 %v108_v11, 0.0 }
  0xd4   :  { %v110_v14 = vpop.f32.mrf.mxu0 }
  0xd5   :  { %v111_v15 = vadd.f32 %v216_v9, %v110_v14  ;;  %v125_v16 = vmax.f32 %v119_v12, 0.0 }
  0xd7   :  { %v123_v18 = vmax.f32 %v111_v15, 0.0  ;;  %v127_v21 = vpack.c.bf16 %v125_v16, %v124_v19 }
  0xd9   :  { %v126_v20 = vpack.c.bf16 %v123_v18, %v122_v17 }
  0xdb   :  { %252 = vmatprep.mubr.msk.bf16.mxu1 %vm151_vm1, %v126_v20 }
  0xdc   :  { %253 = vmatmul.mubr.msk.bf16.vlgmr.msra.gmra.mxu1 %vm151_vm1, %v127_v21 }
 0x19c   :  { %v254_v23 = vpop.f32.mrf.mxu1 }
 0x19d   :  { %v201_v24 = vadd.f32 %v254_v23, %v224_v22 }
 0x19e   :  { %v192_v25 = vpop.f32.mrf.mxu1 }
 0x19f   :  { %210 = vst.msk [vmem:[%s337_s5 + $0x10] sm:$0xff] %vm207_vm2, %v201_v24  ;;  %v193_v26 = vadd.f32 %v224_v22, %v192_v25 }
 0x1a0   :  { %v255_v27 = vpop.f32.mrf.mxu1 }
 0x1a1   :  { %208 = vst.msk [vmem:[%s337_s5] sm:$0xff] %vm207_vm2, %v193_v26  ;;  %v204_v28 = vadd.f32 %v255_v27, %v224_v22 }
 0x1a2   :  { %v195_v29 = vpop.f32.mrf.mxu1 }
 0x1a3   :  { %211 = vst.msk [vmem:[%s337_s5 + $0x18] sm:$0xff] %vm207_vm2, %v204_v28  ;;  %v196_v30 = vadd.f32 %v224_v22, %v195_v29 }
 0x1a5   :  { %209 = vst.msk [vmem:[%s337_s5 + $0x8] sm:$0xff] %vm207_vm2, %v196_v30 }

</bundles_post_ra>
